<compile_context>
chip_gen: v7x
topology: tpu7x:2x2x1
jax: 0.10.0
libtpu: 0.0.40
codegen_flags: <defaults>
</compile_context>

<pallas_src>
import jax
import jax.numpy as jnp
from jax.experimental import pallas as pl
from jax.experimental.pallas import tpu as pltpu


def _round_up(x, m):
    return -(-x // m) * m


def _make_attention_kernel(s_len, b_tile, d_out, e_dim, eup_dtype):
    def kernel(hp_ref, enc_ref, we_ref, v_ref, out_ref):
        # hp_ref:  (1, BT, D)   hidden @ Wh^T + b, precomputed in wrapper (f32)
        # enc_ref: (S, BT, E)   native (src, batch, enc) layout -- no transpose
        # we_ref:  (E, D)       encoder-side weight slice (transposed)
        # v_ref:   (1, 1, D)    attention vector v (f32)
        # out_ref: (BT, E)      weighted context vectors
        enc = enc_ref[...]                                      # (S, BT, E)

        # Single MXU matmul over the whole tile: M = S*BT, K = E, N = D.
        # The flatten is layout-free because BT is a sublane multiple.
        enc2 = enc.reshape(s_len * b_tile, e_dim)
        e_proj = jnp.dot(enc2, we_ref[...],
                         preferred_element_type=jnp.float32)    # (S*BT, D) f32
        e_proj = e_proj.reshape(s_len, b_tile, d_out)           # (S, BT, D)

        # energy = tanh(enc-proj + hidden-proj); tanh in bf16 on v6e/v7x when
        # inputs are bf16 (halves EUP occupancy), f32 otherwise.
        energy = jnp.tanh((e_proj + hp_ref[...]).astype(eup_dtype))

        # scores = v . energy  (lane reduction over D) -> (S, BT, 1), f32.
        scores = jnp.sum(energy.astype(jnp.float32) * v_ref[...],
                         axis=-1, keepdims=True)

        # Numerically stable softmax over src positions (axis 0).
        m = jnp.max(scores, axis=0, keepdims=True)              # (1, BT, 1)
        p = jnp.exp(scores - m)                                 # (S, BT, 1)
        denom = jnp.sum(p, axis=0, keepdims=True)               # (1, BT, 1)

        # weighted = (sum_s p * enc) * (1/denom): reciprocal folded into the
        # small (BT, E) output; no full-size f32 copy of enc for low precision.
        if enc.dtype == jnp.float32:
            weighted = jnp.sum(p * enc, axis=0)                 # (BT, E) f32
        else:
            weighted = jnp.sum(p.astype(enc.dtype) * enc, axis=0,
                               dtype=jnp.float32)               # f32 accumulate
        # approx=True uses the EUP vrcp (~1e-4 rel error vs exact divide).
        inv = pl.reciprocal(denom, approx=True)                 # (1, BT, 1)
        weighted = weighted * inv.reshape(b_tile, 1)            # (BT, E)
        out_ref[...] = weighted.astype(out_ref.dtype)

    return kernel


def attention_forward(hidden, encoder_outputs, attn_w, attn_b, v,
                      *, b_tile=None, eup_dtype=None):
    """
    hidden:          [B, out_dim]
    encoder_outputs: [S, B, enc_hid_dim]   (PyTorch axis convention, kept as-is)
    attn_w:          [out_dim, out_dim + enc_hid_dim]   (PyTorch Linear weight)
    attn_b:          [out_dim]
    v:               [out_dim]
    returns:         [B, enc_hid_dim]
    """
    S, B, E = encoder_outputs.shape
    D = attn_w.shape[0]

    enc_bytes = jnp.dtype(encoder_outputs.dtype).itemsize
    # Dtype-aware sublane multiple: 8 (f32), 16 (bf16), 32 (int8). Keeps the
    # in-kernel flatten layout-free.
    sub = max(8, 32 // max(enc_bytes, 1))

    if b_tile is None:
        # Size the batch tile from a conservative cross-generation VMEM budget
        # (v7x has only 64 MiB/TC): double-buffered enc blocks plus the f32
        # (S, BT, D) intermediates (e_proj / energy) must fit comfortably.
        budget = 24 * 1024 * 1024
        per_row = 2 * S * E * enc_bytes + 2 * S * D * 4
        bt = max(sub, budget // max(per_row, 1))
        if B >= 2 * sub:
            # Keep >= 2 grid steps so the v7x megacore can shard the batch axis.
            bt = min(bt, _round_up(-(-B // 2), sub))
        bt = min(bt, _round_up(B, sub))
        b_tile = max(sub, (bt // sub) * sub)
    Bp = _round_up(B, b_tile)

    if eup_dtype is None:
        # bf16 tanh only when inputs are bf16 AND the chip has a bf16 EUP path
        # (v6e/v7x). v5e and f32 inputs stay f32.
        eup_dtype = jnp.float32
        if encoder_outputs.dtype == jnp.bfloat16:
            try:
                if "v5" not in jax.devices()[0].device_kind.lower():
                    eup_dtype = jnp.bfloat16
            except Exception:
                pass

    # Split the concat-Linear: cat(h, e) @ W^T == h @ Wh^T + e @ We^T.
    wh = attn_w[:, :D]                                          # (D, D)
    we = attn_w[:, D:].T.astype(encoder_outputs.dtype)          # (E, D)

    # Hoisted hidden projection + bias (tiny [B, D] matmul, done by XLA).
    hp = (jnp.dot(hidden.astype(jnp.float32), wh.T.astype(jnp.float32))
          + attn_b.astype(jnp.float32))                         # (B, D) f32
    if Bp != B:
        hp = jnp.pad(hp, ((0, Bp - B), (0, 0)))
    hp = hp[None]                                               # (1, Bp, D)

    # Keep encoder_outputs in its native (S, B, E) layout: no HBM transpose.
    # Padded batch rows are all-zero -> uniform softmax, zero output, sliced off.
    enc = encoder_outputs
    if Bp != B:
        enc = jnp.pad(enc, ((0, 0), (0, Bp - B), (0, 0)))

    v3 = v.reshape(1, 1, D).astype(jnp.float32)

    kernel = _make_attention_kernel(S, b_tile, D, E, eup_dtype)
    out = pl.pallas_call(
        kernel,
        out_shape=jax.ShapeDtypeStruct((Bp, E), hidden.dtype),
        grid_spec=pltpu.PrefetchScalarGridSpec(
            num_scalar_prefetch=0,
            grid=(Bp // b_tile,),
            in_specs=[
                pl.BlockSpec((1, b_tile, D), lambda i: (0, i, 0)),   # hp (per tile)
                pl.BlockSpec((S, b_tile, E), lambda i: (0, i, 0)),   # enc (native layout)
                pl.BlockSpec((E, D), lambda i: (0, 0)),              # We (invariant)
                pl.BlockSpec((1, 1, D), lambda i: (0, 0, 0)),        # v  (invariant)
            ],
            out_specs=pl.BlockSpec((b_tile, E), lambda i: (i, 0)),
        ),
        compiler_params=pltpu.CompilerParams(
            dimension_semantics=("parallel",),
            # Explicit limit: above v5e's 16 MiB scoped default, below v7x's
            # 64 MiB physical; the b_tile budget above stays well under it.
            vmem_limit_bytes=48 * 1024 * 1024),
    )(hp, enc, we, v3)
    return out[:B]


def _reference(hidden, encoder_outputs, attn_w, attn_b, v):
    # Pure-JAX replica of the PyTorch forward (for correctness checking).
    S, B, E = encoder_outputs.shape
    h_rep = jnp.repeat(hidden[:, None, :], S, axis=1)           # [B, S, D]
    enc = jnp.transpose(encoder_outputs, (1, 0, 2))             # [B, S, E]
    cat = jnp.concatenate([h_rep, enc], axis=2)                 # [B, S, D+E]
    energy = jnp.tanh(cat @ attn_w.T + attn_b)                  # [B, S, D]
    attention = jnp.einsum("d,bsd->bs", v, energy)              # [B, S]
    a = jax.nn.softmax(attention, axis=1)                       # [B, S]
    weighted = jnp.einsum("bs,bse->be", a, enc)                 # [B, E]
    return weighted


if __name__ == "__main__":
    key = jax.random.PRNGKey(0)
    k1, k2, k3, k4, k5 = jax.random.split(key, 5)

    batch = 2
    src_len = 8
    enc_hid_dim = 32
    out_dim = 32

    # Synthetic parameters matching nn.Linear(out_dim+enc_hid_dim, out_dim)
    # and nn.Parameter(torch.rand(out_dim)).
    fan_in = out_dim + enc_hid_dim
    bound = 1.0 / jnp.sqrt(fan_in)
    attn_w = jax.random.uniform(k1, (out_dim, fan_in), jnp.float32, -bound, bound)
    attn_b = jax.random.uniform(k2, (out_dim,), jnp.float32, -bound, bound)
    v = jax.random.uniform(k3, (out_dim,), jnp.float32, 0.0, 1.0)

    hidden = jax.random.normal(k4, (batch, out_dim), jnp.float32)
    encoder_outputs = jax.random.normal(k5, (src_len, batch, enc_hid_dim), jnp.float32)

    out = attention_forward(hidden, encoder_outputs, attn_w, attn_b, v)
    out = jax.block_until_ready(out)

    ref = _reference(hidden, encoder_outputs, attn_w, attn_b, v)
    assert out.shape == (batch, enc_hid_dim)
    # Tolerance accounts for the approx=True (EUP) reciprocal in the softmax.
    assert jnp.allclose(out, ref, atol=2e-3, rtol=2e-3), "mismatch vs reference"

    print("KERNEL_OK")
</pallas_src>

<mosaic_0001>
module attributes {stable_mosaic.version = 11 : i64} {
  func.func @kernel(%arg0: i32, %arg1: memref<1x8x32xf32, #tpu.memory_space<vmem>>, %arg2: memref<8x8x32xf32, #tpu.memory_space<vmem>>, %arg3: memref<32x32xf32, #tpu.memory_space<vmem>>, %arg4: memref<1x1x32xf32, #tpu.memory_space<vmem>>, %arg5: memref<8x32xf32, #tpu.memory_space<vmem>>) attributes {dimension_semantics = [#tpu.dimension_semantics<parallel>], iteration_bounds = array<i64: 1>, scalar_prefetch = 0 : i64, scratch_operands = 0 : i64, tpu.core_type = #tpu.core_type<tc>, window_params = [{transform_indices = @transform_0, window_bounds = array<i64: 1, 8, 32>}, {transform_indices = @transform_1, window_bounds = array<i64: 8, 8, 32>}, {pipeline_mode = #tpu.pipeline_mode<synchronous>, transform_indices = @transform_2, window_bounds = array<i64: 32, 32>}, {pipeline_mode = #tpu.pipeline_mode<synchronous>, transform_indices = @transform_3, window_bounds = array<i64: 1, 1, 32>}, {transform_indices = @transform_4, window_bounds = array<i64: 8, 32>}]} {
    %c0 = arith.constant 0 : index
    %c0_0 = arith.constant 0 : index
    %c0_1 = arith.constant 0 : index
    %0 = vector.load %arg2[%c0, %c0_0, %c0_1] : memref<8x8x32xf32, #tpu.memory_space<vmem>>, vector<8x8x32xf32>
    %1 = vector.shape_cast %0 : vector<8x8x32xf32> to vector<64x32xf32>
    %c0_2 = arith.constant 0 : index
    %c0_3 = arith.constant 0 : index
    %2 = vector.load %arg3[%c0_2, %c0_3] : memref<32x32xf32, #tpu.memory_space<vmem>>, vector<32x32xf32>
    %cst = arith.constant dense<0.000000e+00> : vector<64x32xf32>
    %3 = tpu.matmul %1, %2, %cst {dimension_numbers = #tpu.dot_dimension_numbers<[1], [0], [0], [1], [0, 0, 1, 1], [], []>} : vector<64x32xf32>, vector<32x32xf32>, vector<64x32xf32> -> vector<64x32xf32>
    %4 = vector.shape_cast %3 : vector<64x32xf32> to vector<8x8x32xf32>
    %c0_4 = arith.constant 0 : index
    %c0_5 = arith.constant 0 : index
    %c0_6 = arith.constant 0 : index
    %5 = vector.load %arg1[%c0_4, %c0_5, %c0_6] : memref<1x8x32xf32, #tpu.memory_space<vmem>>, vector<1x8x32xf32>
    %6 = vector.broadcast %5 : vector<1x8x32xf32> to vector<8x8x32xf32>
    %7 = arith.addf %4, %6 : vector<8x8x32xf32>
    %8 = math.tanh %7 : vector<8x8x32xf32>
    %c0_7 = arith.constant 0 : index
    %c0_8 = arith.constant 0 : index
    %c0_9 = arith.constant 0 : index
    %9 = vector.load %arg4[%c0_7, %c0_8, %c0_9] : memref<1x1x32xf32, #tpu.memory_space<vmem>>, vector<1x1x32xf32>
    %10 = vector.broadcast %9 : vector<1x1x32xf32> to vector<8x8x32xf32>
    %11 = arith.mulf %8, %10 : vector<8x8x32xf32>
    %cst_10 = arith.constant dense<0.000000e+00> : vector<8x8xf32>
    %12 = vector.multi_reduction <add>, %11, %cst_10 [2] : vector<8x8x32xf32> to vector<8x8xf32>
    %13 = vector.shape_cast %12 : vector<8x8xf32> to vector<8x8x1xf32>
    %cst_11 = arith.constant dense<0xFF800000> : vector<8x1xf32>
    %14 = vector.multi_reduction <maximumf>, %13, %cst_11 [0] : vector<8x8x1xf32> to vector<8x1xf32>
    %15 = vector.shape_cast %14 : vector<8x1xf32> to vector<1x8x1xf32>
    %16 = vector.broadcast %15 : vector<1x8x1xf32> to vector<8x8x1xf32>
    %17 = arith.subf %13, %16 : vector<8x8x1xf32>
    %18 = math.exp %17 : vector<8x8x1xf32>
    %cst_12 = arith.constant dense<0.000000e+00> : vector<8x1xf32>
    %19 = vector.multi_reduction <add>, %18, %cst_12 [0] : vector<8x8x1xf32> to vector<8x1xf32>
    %20 = vector.shape_cast %19 : vector<8x1xf32> to vector<1x8x1xf32>
    %21 = vector.broadcast %18 : vector<8x8x1xf32> to vector<8x8x32xf32>
    %22 = arith.mulf %21, %0 : vector<8x8x32xf32>
    %cst_13 = arith.constant dense<0.000000e+00> : vector<8x32xf32>
    %23 = vector.multi_reduction <add>, %22, %cst_13 [0] : vector<8x8x32xf32> to vector<8x32xf32>
    %24 = tpu.reciprocal %20 {approx = true} : vector<1x8x1xf32> -> vector<1x8x1xf32>
    %25 = vector.shape_cast %24 : vector<1x8x1xf32> to vector<8x1xf32>
    %26 = vector.broadcast %25 : vector<8x1xf32> to vector<8x32xf32>
    %27 = arith.mulf %23, %26 : vector<8x32xf32>
    %c0_14 = arith.constant 0 : index
    %c0_15 = arith.constant 0 : index
    %28 = vector.load %arg5[%c0_14, %c0_15] : memref<8x32xf32, #tpu.memory_space<vmem>>, vector<8x32xf32>
    tpu.vector_store %arg5[%c0_14, %c0_15], %27 {strides = array<i32>} : memref<8x32xf32, #tpu.memory_space<vmem>>, vector<8x32xf32>,
    return
  }
  func.func @transform_0(%arg0: i32) -> (i32, i32, i32) {
    %c0_i32 = arith.constant 0 : i32
    %c0_i32_0 = arith.constant 0 : i32
    %c0_i32_1 = arith.constant 0 : i32
    return %c0_i32, %arg0, %c0_i32_0 : i32, i32, i32
  }
  func.func @transform_1(%arg0: i32) -> (i32, i32, i32) {
    %c0_i32 = arith.constant 0 : i32
    %c0_i32_0 = arith.constant 0 : i32
    %c0_i32_1 = arith.constant 0 : i32
    return %c0_i32, %arg0, %c0_i32_0 : i32, i32, i32
  }
  func.func @transform_2(%arg0: i32) -> (i32, i32) {
    %c0_i32 = arith.constant 0 : i32
    %c0_i32_0 = arith.constant 0 : i32
    %c0_i32_1 = arith.constant 0 : i32
    return %c0_i32, %c0_i32_0 : i32, i32
  }
  func.func @transform_3(%arg0: i32) -> (i32, i32, i32) {
    %c0_i32 = arith.constant 0 : i32
    %c0_i32_0 = arith.constant 0 : i32
    %c0_i32_1 = arith.constant 0 : i32
    %c0_i32_2 = arith.constant 0 : i32
    return %c0_i32, %c0_i32_0, %c0_i32_1 : i32, i32, i32
  }
  func.func @transform_4(%arg0: i32) -> (i32, i32) {
    %c0_i32 = arith.constant 0 : i32
    %c0_i32_0 = arith.constant 0 : i32
    return %arg0, %c0_i32 : i32, i32
  }
}

</mosaic_0001>

<bundles_post_ra>
// kernel: tpu_custom_call.1
= control target key start
LH: loop header
LB: loop body
LE: loop exit
PB: predicated region body
PF: predicated region fallthrough
CT: control target
= control target key end

     0   :  { %9 = vsyncpa [#allocation3], 0  ;;  %s667_s0 = inlined_call_operand.hbm [shape: f32[1,8,32], index: 0, kind: input, shape index: {}]   ;;  %s668_s1 = inlined_call_operand.hbm [shape: f32[8,8,32], index: 1, kind: input, shape index: {}]   ;;  %s669_s2 = inlined_call_operand.hbm [shape: f32[32,32], index: 2, kind: input, shape index: {}]   ;;  %s670_s3 = inlined_call_operand.vmem [shape: f32[1,1,32], index: 3, kind: input, shape index: {}]   ;;  %s671_s4 = inlined_call_operand.hbm [shape: f32[8,32], index: 4, kind: output, shape index: {}]  }
   0x1   :  { %10 = vsyncpa [#allocation6], 0 }
   0x2   :  { %11 = vsyncpa [#allocation4], 0  ;;  %s522_s15 = smov [#allocation5]   ;;  %s428_s19 = scalar_lea.hbm %s668_s1, 1024 }
   0x3   :  { %s27_s16 = sshll.u32 %s522_s15, 4  ;;  %p429_p0 = scmp.ne.s32.totalorder %s668_s1, %s428_s19  ;;  %s28_s16 = int_to_ptr.vmem [resolvable:$true] %s27_s16 }
   0x4   :  { %p432_p1 = scmp.lt.u32.totalorder %s428_s19, %s668_s1 }
   0x6   :  { %p434_p2 = pnand %p432_p1, %p429_p0 }
   0x8   :  { %437 = shalt.err (!%p434_p2)
}
   0x9   :  { %s438_s24 = scalar_lea.vmem %s28_s16, 1024  ;;  %p443_p4 = scmp.lt.s32.totalorder %s28_s16, %s28_s16 }
   0xa   :  { %p439_p3 = scmp.ne.s32.totalorder %s28_s16, %s438_s24  ;;  %p444_p5 = scmp.lt.s32.totalorder %s438_s24, %s438_s24 }
   0xc   :  { %p445_p6 = por %p444_p5, %p443_p4 }
   0xe   :  { %p446_p7 = pnand %p445_p6, %p439_p3 }
  0x10   :  { %449 = shalt.err (!%p446_p7)
}
  0x11   :  { %s523_s25 = smov 128   ;;  %s524_s26 = smov 8  }
  0x12   :  { %33 = dma.hbm_to_vmem [thread:$0]  %s668_s1, 1024, %s28_s16, [#allocation6], %s523_s25, %s523_s25, %s524_s26  }
  0x13   :  { %s525_s29 = smov [#allocation2]   ;;  %s526_s5 = smov [#allocation7]  }
  0x14   :  { %s18_s30 = sshll.u32 %s525_s29, 4  ;;  %s39_s6 = sshll.u32 %s526_s5, 4  ;;  %s19_s30 = int_to_ptr.vmem [resolvable:$true] %s18_s30  ;;  %s40_s6 = int_to_ptr.vmem [resolvable:$true] %s39_s6 }
  0x15   :  { %s450_s9 = scalar_lea.hbm %s667_s0, 128 }
  0x16   :  { %p451_p8 = scmp.ne.s32.totalorder %s667_s0, %s450_s9  ;;  %p454_p9 = scmp.lt.u32.totalorder %s450_s9, %s667_s0 }
  0x18   :  { %p456_p10 = pnand %p454_p9, %p451_p8 }
  0x1a   :  { %459 = shalt.err (!%p456_p10)
}
  0x1b   :  { %s460_s1 = scalar_lea.vmem %s19_s30, 128  ;;  %p465_p12 = scmp.lt.s32.totalorder %s19_s30, %s19_s30 }
  0x1c   :  { %p461_p11 = scmp.ne.s32.totalorder %s19_s30, %s460_s1  ;;  %p466_p13 = scmp.lt.s32.totalorder %s460_s1, %s460_s1 }
  0x1e   :  { %p467_p0 = por %p466_p13, %p465_p12 }
  0x20   :  { %p468_p1 = pnand %p467_p0, %p461_p11 }
  0x22   :  { %471 = shalt.err (!%p468_p1)
}
  0x23   :  { %21 = dma.hbm_to_vmem [thread:$0]  %s667_s0, 128, %s19_s30, [#allocation3]  }
  0x24   :  { %s472_s18 = scalar_lea.hbm %s669_s2, 512 }
  0x25   :  { %p473_p2 = scmp.ne.s32.totalorder %s669_s2, %s472_s18  ;;  %p476_p3 = scmp.lt.u32.totalorder %s472_s18, %s669_s2 }
  0x27   :  { %p478_p4 = pnand %p476_p3, %p473_p2 }
  0x29   :  { %481 = shalt.err (!%p478_p4)
}
  0x2a   :  { %s482_s23 = scalar_lea.vmem %s40_s6, 512  ;;  %p487_p6 = scmp.lt.s32.totalorder %s40_s6, %s40_s6 }
  0x2b   :  { %p483_p5 = scmp.ne.s32.totalorder %s40_s6, %s482_s23  ;;  %p488_p7 = scmp.lt.s32.totalorder %s482_s23, %s482_s23 }
  0x2d   :  { %p489_p8 = por %p488_p7, %p487_p6 }
  0x2f   :  { %p490_p9 = pnand %p489_p8, %p483_p5 }
  0x31   :  { %493 = shalt.err (!%p490_p9)
}
  0x32   :  { %45 = dma.hbm_to_vmem [thread:$0]  %s669_s2, 512, %s40_s6, [#allocation6], %s523_s25, %s523_s25, %s524_s26  }
  0x33   :  { %516 = dma.done.wait [#allocation3], 128  }
  0x34   :  { %517 = vsyncadd [#allocation3], 4294967168 }
  0x35   :  { %518 = dma.done.wait [#allocation6], 1536  }
  0x36   :  { %519 = vsyncadd [#allocation6], 4294965760  ;;  %vm69_vm0 = vcmask 261120   ;;  %v65_v0 = vld [vmem:[#allocation7] sm:$0xff]  ;;  %v66_v1 = vld [vmem:[#allocation7 + $0x8] sm:$0xff] }
  0x37   :  { %v67_v2 = vld [vmem:[#allocation7 + $0x10] sm:$0xff]  ;;  %v376_v3 = vpack.c.bf16 %v66_v1, %v65_v0  ;;  %v68_v4 = vld [vmem:[#allocation7 + $0x18] sm:$0xff]  ;;  %v595_v5 = vld [vmem:[#allocation5] sm:$0xff] }
  0x38   :  { %v597_v6 = vld [vmem:[#allocation5 + $0x20] sm:$0xff]  ;;  %v380_v7 = vpack.c.bf16 %v68_v4, %v67_v2  ;;  %364 = vmatprep.mubr.msk.f32.mxu0 %vm69_vm0, %v595_v5  ;;  %v603_v8 = vld [vmem:[#allocation5 + $0x8] sm:$0xff]  ;;  %v607_v10 = vld [vmem:[#allocation5 + $0x10] sm:$0xff] }
  0x39   :  { %370 = vmatprep.mubr.msk.f32.mxu1 %vm69_vm0, %v597_v6  ;;  %377 = vmatprep.subr.bf16.mxu0 %v376_v3  ;;  %v605_v9 = vld [vmem:[#allocation5 + $0x28] sm:$0xff]  ;;  %v609_v11 = vld [vmem:[#allocation5 + $0x30] sm:$0xff]  ;;  %v617_v12 = vld [vmem:[#allocation5 + $0x18] sm:$0xff] }
  0x3a   :  { %384 = vmatprep.subr.bf16.mxu1 %v376_v3  ;;  %379 = vmatpush3.bf16.msra.mxu0 %v376_v3  ;;  %v621_v13 = vld [vmem:[#allocation5 + $0x38] sm:$0xff] }
  0x3b   :  { %386 = vmatpush3.bf16.msra.mxu1 %v376_v3  ;;  %381 = vmatprep.subr.bf16.mxu0 %v380_v7  ;;  %v199_v14 = vld [vmem:[#allocation2] sm:$0xff] }
  0x3c   :  { %385 = vmatprep.subr.bf16.mxu1 %v380_v7  ;;  %v343_v31 = vld [vmem:[%s670_s3] ss:$0 sm:$0xff]  ;;  %s527_s3 = smov [#allocation8]  }
  0x3d   :  { %s325_s26 = sshll.u32 %s527_s3, 4  ;;  %s326_s26 = int_to_ptr.vmem [resolvable:$true] %s325_s26 }
  0x3e   :  { %383 = vmatpush3.bf16.msra.mxu0 %v380_v7  ;;  %s494_s27 = scalar_lea.vmem %s326_s26, 128  ;;  %p499_p11 = scmp.lt.s32.totalorder %s326_s26, %s326_s26 }
  0x3f   :  { %387 = vmatpush3.bf16.msra.mxu1 %v380_v7  ;;  %p495_p10 = scmp.ne.s32.totalorder %s326_s26, %s494_s27  ;;  %p500_p12 = scmp.lt.s32.totalorder %s494_s27, %s494_s27 }
  0x41   :  { %365 = vmatmul.mubr.msk.f32.vlgmr.msra.gmra.mrb[0].mxu0 %vm69_vm0, %v603_v8  ;;  %p501_p13 = por %p500_p12, %p499_p11 }
  0x42   :  { %371 = vmatmul.mubr.msk.f32.vlgmr.msra.gmra.mrb[0].mxu1 %vm69_vm0, %v605_v9  ;;  %367 = vmatprep.mubr.msk.f32.mxu0 %vm69_vm0, %v607_v10 }
  0x43   :  { %373 = vmatprep.mubr.msk.f32.mxu1 %vm69_vm0, %v609_v11  ;;  %p502_p0 = pnand %p501_p13, %p495_p10 }
  0x45   :  { %368 = vmatmul.mubr.msk.f32.gmra.mrb[2].mxu0 %vm69_vm0, %v617_v12 }
  0x46   :  { %374 = vmatmul.mubr.msk.f32.gmra.mrb[2].mxu1 %vm69_vm0, %v621_v13 }
 0x114   :  { %v366_v15 = vpop.f32.mrb[0].mxu0 }
 0x115   :  { %v372_v16 = vpop.f32.mrb[0].mxu1  ;;  %v201_v17 = vadd.f32 %v366_v15, %v199_v14  ;;  %v160_v19 = vpop.f32.mrb[1].mxu0 }
 0x116   :  { %v205_v18 = vadd.f32 %v372_v16, %v199_v14  ;;  %v180_v20 = vpop.f32.mrb[1].mxu1  ;;  %v200_v21 = vadd.f32 %v199_v14, %v160_v19 }
 0x117   :  { %v204_v22 = vadd.f32 %v199_v14, %v180_v20  ;;  %394 = vtanh.f32 %v201_v17 }
 0x118   :  { %396 = vtanh.f32 %v205_v18  ;;  %v369_v23 = vpop.f32.mrb[2].mxu0 }
 0x119   :  { %v375_v24 = vpop.f32.mrb[2].mxu1  ;;  %398 = vtanh.f32 %v200_v21  ;;  %v203_v25 = vadd.f32 %v369_v23, %v199_v14  ;;  %v170_v26 = vpop.f32.mrb[3].mxu0 }
 0x11a   :  { %v207_v27 = vadd.f32 %v375_v24, %v199_v14  ;;  %v190_v28 = vpop.f32.mrb[3].mxu1  ;;  %400 = vtanh.f32 %v204_v22  ;;  %v202_v29 = vadd.f32 %v199_v14, %v170_v26 }
 0x11b   :  { %v206_v30 = vadd.f32 %v199_v14, %v190_v28  ;;  %402 = vtanh.f32 %v203_v25 }
 0x11c   :  { %404 = vtanh.f32 %v202_v29 }
 0x11d   :  { %406 = vtanh.f32 %v207_v27 }
 0x11e   :  { %408 = vtanh.f32 %v206_v30 }
 0x121   :  { %v395_v32 = vpop.eup %394 }
 0x122   :  { %v397_v33 = vpop.eup %396  ;;  %v224_v34 = vmul.f32 %v395_v32, %v343_v31 }
 0x123   :  { %v399_v35 = vpop.eup %398  ;;  %v228_v36 = vmul.f32 %v397_v33, %v343_v31 }
 0x124   :  { %v401_v37 = vpop.eup %400  ;;  %v234_v38 = vsel %vm69_vm0, %v224_v34, 0.0  ;;  %v223_v39 = vmul.f32 %v399_v35, %v343_v31 }
 0x125   :  { %v403_v40 = vpop.eup %402  ;;  %v246_v41 = vsel %vm69_vm0, %v228_v36, 0.0  ;;  %235 = vadd.xlane.f32.xlu0 %v234_v38  ;;  %v227_v48 = vmul.f32 %v401_v37, %v343_v31 }
 0x126   :  { %v405_v42 = vpop.eup %404  ;;  %247 = vadd.xlane.f32.xlu1 %v246_v41  ;;  %v226_v43 = vmul.f32 %v403_v40, %v343_v31  ;;  %v231_v46 = vsel %vm69_vm0, %v223_v39, 0.0 }
 0x127   :  { %v407_v44 = vpop.eup %406  ;;  %v225_v49 = vmul.f32 %v405_v42, %v343_v31  ;;  %v243_v52 = vsel %vm69_vm0, %v227_v48, 0.0 }
 0x128   :  { %v409_v45 = vpop.eup %408  ;;  %v240_v47 = vsel %vm69_vm0, %v226_v43, 0.0  ;;  %v230_v51 = vmul.f32 %v407_v44, %v343_v31 }
 0x129   :  { %232 = vadd.xlane.f32.xlu0 %v231_v46  ;;  %v229_v50 = vmul.f32 %v409_v45, %v343_v31  ;;  %v237_v53 = vsel %vm69_vm0, %v225_v49, 0.0 }
 0x12a   :  { %241 = vadd.xlane.f32.xlu1 %v240_v47  ;;  %v252_v55 = vsel %vm69_vm0, %v230_v51, 0.0 }
 0x12b   :  { %v249_v54 = vsel %vm69_vm0, %v229_v50, 0.0 }
 0x12d   :  { %244 = vadd.xlane.f32.xlu0 %v243_v52 }
 0x12e   :  { %238 = vadd.xlane.f32.xlu1 %v237_v53 }
 0x131   :  { %250 = vadd.xlane.f32.xlu0 %v249_v54 }
 0x132   :  { %253 = vadd.xlane.f32.xlu1 %v252_v55 }
 0x1b2   :  { %v236_v56 = vpop.xlane.xlu0 %235 }
 0x1b3   :  { %v248_v57 = vpop.xlane.xlu1 %247 }
 0x1b4   :  { %v256_v2 = vmax.f32 %v236_v56, %v248_v57 }
 0x1b6   :  { %v233_v58 = vpop.xlane.xlu0 %232 }
 0x1b7   :  { %v242_v59 = vpop.xlane.xlu1 %241 }
 0x1ba   :  { %v245_v60 = vpop.xlane.xlu0 %244 }
 0x1bb   :  { %v239_v61 = vpop.xlane.xlu1 %238  ;;  %v255_v62 = vmax.f32 %v233_v58, %v245_v60 }
 0x1bd   :  { %v259_v4 = vmax.f32 %v255_v62, %v256_v2 }
 0x1be   :  { %v251_v63 = vpop.xlane.xlu0 %250 }
 0x1bf   :  { %v257_v0 = vmax.f32 %v239_v61, %v251_v63  ;;  %v254_v1 = vpop.xlane.xlu1 %253 }
 0x1c0   :  { %v258_v3 = vmax.f32 %v242_v59, %v254_v1 }
 0x1c2   :  { %v260_v7 = vmax.f32 %v257_v0, %v258_v3 }
 0x1c4   :  { %v261_v14 = vmax.f32 %v259_v4, %v260_v7 }
 0x1c6   :  { %v262_v15 = vsub.f32 %v233_v58, %v261_v14  ;;  %v263_v16 = vsub.f32 %v236_v56, %v261_v14  ;;  %v264_v17 = vsub.f32 %v239_v61, %v261_v14  ;;  %v265_v18 = vsub.f32 %v242_v59, %v261_v14 }
 0x1c7   :  { %v266_v19 = vsub.f32 %v245_v60, %v261_v14  ;;  %v267_v24 = vsub.f32 %v248_v57, %v261_v14  ;;  %v268_v26 = vsub.f32 %v251_v63, %v261_v14  ;;  %v269_v27 = vsub.f32 %v254_v1, %v261_v14 }
 0x1c8   :  { %v270_v20 = vmul.f32 1.442695, %v262_v15  ;;  %v272_v21 = vmul.f32 1.442695, %v263_v16  ;;  %v274_v22 = vmul.f32 1.442695, %v264_v17 }
 0x1c9   :  { %v276_v23 = vmul.f32 1.442695, %v265_v18  ;;  %v278_v25 = vmul.f32 1.442695, %v266_v19  ;;  %v280_v28 = vmul.f32 1.442695, %v267_v24 }
 0x1ca   :  { %410 = vpow2.f32 %v270_v20  ;;  %v282_v29 = vmul.f32 1.442695, %v268_v26  ;;  %v284_v30 = vmul.f32 1.442695, %v269_v27 }
 0x1cb   :  { %412 = vpow2.f32 %v272_v21 }
 0x1cc   :  { %414 = vpow2.f32 %v274_v22 }
 0x1cd   :  { %416 = vpow2.f32 %v276_v23 }
 0x1ce   :  { %418 = vpow2.f32 %v278_v25 }
 0x1cf   :  { %420 = vpow2.f32 %v280_v28 }
 0x1d0   :  { %422 = vpow2.f32 %v282_v29 }
 0x1d1   :  { %424 = vpow2.f32 %v284_v30 }
 0x1d4   :  { %v411_v31 = vpop.eup %410 }
 0x1d5   :  { %v413_v32 = vpop.eup %412  ;;  %v293_v33 = vmul.f32 %v411_v31, %v595_v5 }
 0x1d6   :  { %v415_v34 = vpop.eup %414  ;;  %v286_v35 = vadd.f32 %v413_v32, %v411_v31  ;;  %v294_v36 = vmul.f32 %v413_v32, %v603_v8 }
 0x1d7   :  { %v417_v37 = vpop.eup %416  ;;  %v295_v38 = vmul.f32 %v415_v34, %v607_v10  ;;  %v301_v39 = vsel %vm69_vm0, %v293_v33, 0.0 }
 0x1d8   :  { %v287_v40 = vadd.f32 %v415_v34, %v286_v35  ;;  %v296_v41 = vmul.f32 %v417_v37, %v617_v12  ;;  %v302_v42 = vsel %vm69_vm0, %v294_v36, 0.0  ;;  %v419_v43 = vpop.eup %418 }
 0x1d9   :  { %v303_v44 = vadd.f32 %v302_v42, %v301_v39  ;;  %v304_v5 = vsel %vm69_vm0, %v295_v38, 0.0  ;;  %v297_v8 = vmul.f32 %v419_v43, %v597_v6  ;;  %v421_v49 = vpop.eup %420 }
 0x1da   :  { %v288_v45 = vadd.f32 %v417_v37, %v287_v40  ;;  %v306_v48 = vsel %vm69_vm0, %v296_v41, 0.0  ;;  %v423_v51 = vpop.eup %422  ;;  %v298_v12 = vmul.f32 %v421_v49, %v605_v9 }
 0x1db   :  { %v305_v46 = vadd.f32 %v304_v5, %v303_v44  ;;  %v308_v53 = vsel %vm69_vm0, %v297_v8, 0.0  ;;  %v425_v54 = vpop.eup %424  ;;  %v299_v57 = vmul.f32 %v423_v51, %v609_v11 }
 0x1dc   :  { %v289_v47 = vadd.f32 %v419_v43, %v288_v45  ;;  %v310_v58 = vsel %vm69_vm0, %v298_v12, 0.0  ;;  %v300_v59 = vmul.f32 %v425_v54, %v621_v13 }
 0x1dd   :  { %v307_v10 = vadd.f32 %v306_v48, %v305_v46  ;;  %v312_v60 = vsel %vm69_vm0, %v299_v57, 0.0 }
 0x1de   :  { %v290_v50 = vadd.f32 %v421_v49, %v289_v47  ;;  %v314_v62 = vsel %vm69_vm0, %v300_v59, 0.0 }
 0x1df   :  { %v309_v55 = vadd.f32 %v308_v53, %v307_v10 }
 0x1e0   :  { %v291_v52 = vadd.f32 %v423_v51, %v290_v50 }
 0x1e1   :  { %v311_v6 = vadd.f32 %v310_v58, %v309_v55 }
 0x1e2   :  { %v292_v56 = vadd.f32 %v425_v54, %v291_v52 }
 0x1e3   :  { %v313_v61 = vadd.f32 %v312_v60, %v311_v6 }
 0x1e4   :  { %426 = vrcp.f32 %v292_v56 }
 0x1e5   :  { %v315_v9 = vadd.f32 %v314_v62, %v313_v61 }
 0x1ee   :  { %v427_v63 = vpop.eup %426 }
 0x1ef   :  { %v317_v0 = vmul.f32 %v427_v63, %v315_v9 }
 0x1f1   :  { %318 = vst.msk [vmem:[#allocation8] sm:$0xff] %vm69_vm0, %v317_v0 }
 0x1f2   :  { %505 = shalt.err (!%p502_p0)
}
 0x1f3   :  { %s506_s30 = scalar_lea.hbm %s671_s4, 128 }
 0x1f4   :  { %p507_p1 = scmp.ne.s32.totalorder %s671_s4, %s506_s30  ;;  %p510_p2 = scmp.lt.u32.totalorder %s506_s30, %s671_s4 }
 0x1f6   :  { %p512_p3 = pnand %p510_p2, %p507_p1 }
 0x1f8   :  { %515 = shalt.err (!%p512_p3)
}
 0x1f9   :  { %328 = dma.vmem_to_hbm [thread:$0]  %s326_s26, 128, %s671_s4, [#allocation4]  }
 0x1fa   :  { %520 = dma.done.wait [#allocation4], 128  }
 0x1fb   :  { %521 = vsyncadd [#allocation4], 4294967168 }
 0x1fc   :  { %332 = vsyncpa [#allocation3], 1 }
 0x1fd   :  { %333 = vsyncpa [#allocation6], 1 }
 0x1fe   :  { %334 = vsyncpa [#allocation4], 1 }

</bundles_post_ra>
